<compile_context>
chip_gen: v7x
topology: tpu7x:2x2x1
jax: 0.10.0
libtpu: 0.0.40
codegen_flags: <defaults>
</compile_context>

<pallas_src>
import jax
import jax.numpy as jnp
from jax.experimental import pallas as pl
from jax.experimental.pallas import tpu as pltpu

EPS = 1e-5


def transition_kernel(x_ref, scale_ref, bias_ref, w_ref, o_ref):
    # x_ref:     (NB, TH, W, Cin)    NHWC input strip (NB images x TH rows)
    # scale_ref: (1, Cin) f32        folded BN scale  (gamma / sqrt(var+eps))
    # bias_ref:  (1, Cin) f32        folded BN shift  (beta - mean*scale)
    # w_ref:     (Cin, Cout)         1x1 conv weight with the 0.25 pool factor folded in
    # o_ref:     (NB, THo*Wo, Cout)  pooled + projected output slab (lane-dense)
    NB, TH, W, Cin = x_ref.shape
    THo, Wo = TH // 2, W // 2
    Cout = w_ref.shape[1]

    scale = scale_ref[...]
    bias = bias_ref[...]

    # Width pooling via two sublane-strided loads (each element is read exactly once);
    # BatchNorm + ReLU applied elementwise on the VPU in f32, then a single add.
    xe = x_ref[:, :, pl.ds(0, Wo, stride=2), :].astype(jnp.float32)
    xo = x_ref[:, :, pl.ds(1, Wo, stride=2), :].astype(jnp.float32)
    ye = jnp.maximum(xe * scale + bias, 0.0)
    yo = jnp.maximum(xo * scale + bias, 0.0)
    yw = ye + yo                                              # (NB, TH, Wo, Cin)

    # Height pooling: leading-dim regroup (free) + VPU add of even/odd row slabs.
    yr = yw.reshape(NB, THo, 2, Wo, Cin)
    pooled = (yr[:, :, 0] + yr[:, :, 1]).reshape(NB * THo * Wo, Cin)

    # 1x1 conv == per-pooled-pixel matmul: the ONLY MXU work in the kernel.
    # (The 2x2-average 1/4 is already folded into w, so the pooling above was adds.)
    z = jnp.dot(pooled.astype(w_ref.dtype), w_ref[...],
                preferred_element_type=jnp.float32)           # (NB*THo*Wo, Cout)

    o_ref[...] = z.reshape(NB, THo * Wo, Cout).astype(o_ref.dtype)


def _pick_blocks(N, H, W, Cin, itemsize, target_bytes=4 << 20):
    """Pick (NB images, TH rows) per grid step.

    TH: largest even divisor of H whose pooled-row count is sublane-tile aligned
        (or the full image) and whose single-image strip fits the byte budget.
    NB: pack images while the block still fits; keep >= 2 grid steps when possible
        so a v7x chip (2 TensorCores) always has work for both cores.
    """
    Wo = W // 2
    sub = 8 if itemsize >= 4 else 16

    def strip_bytes(th, nb):
        return nb * th * W * Cin * itemsize

    ths = [t for t in range(2, H + 1, 2)
           if H % t == 0 and (((t // 2) * Wo) % sub == 0 or t == H)]
    fitting = [t for t in ths if strip_bytes(t, 1) <= target_bytes]
    th = max(fitting) if fitting else min(ths)

    if H // th > 1:
        nb_cap = N
    else:
        nb_cap = max(1, N // 2) if N > 1 else 1

    nb = 1
    for cand in range(2, nb_cap + 1):
        if N % cand == 0 and strip_bytes(th, cand) <= target_bytes:
            nb = cand
    return nb, th


def transition_forward(x_nchw, gamma, beta, conv_w, eps=EPS,
                       compute_dtype=jnp.float32,
                       target_block_bytes=4 << 20,
                       vmem_limit_bytes=32 << 20):
    """Matches nn.Sequential(BN2d(train), ReLU, Conv2d(1x1, bias=False), AvgPool2d(2,2)).

    x_nchw: (N, Cin, H, W); gamma/beta: (Cin,); conv_w: (Cout, Cin, 1, 1)
    returns: (N, Cout, H//2, W//2) float32
    """
    N, Cin, H, W = x_nchw.shape
    Cout = conv_w.shape[0]
    assert H % 2 == 0 and W % 2 == 0

    # NCHW -> NHWC once (channels on the lane dim).  Batch statistics are computed
    # from this copy -- no separate f32 NCHW materialization.
    # TODO(synk): if the surrounding network were NHWC end-to-end (and BN used
    # running stats at inference), this transpose, the final transpose back, and
    # the stats pass below all disappear and the kernel reads x exactly once.
    x_nhwc_f32 = jnp.transpose(x_nchw, (0, 2, 3, 1)).astype(jnp.float32)

    # Training-mode BatchNorm batch stats: two-pass centered variance (robust,
    # biased -- matches PyTorch's forward normalization).
    mean = jnp.mean(x_nhwc_f32, axis=(0, 1, 2))
    var = jnp.mean(jnp.square(x_nhwc_f32 - mean), axis=(0, 1, 2))
    scale = gamma.astype(jnp.float32) / jnp.sqrt(var + eps)
    bias = beta.astype(jnp.float32) - mean * scale

    x = x_nhwc_f32.astype(compute_dtype)
    # Fold the 2x2 average-pool 1/4 into the conv weight (exact: pooling is linear
    # and sits after the ReLU), so in-kernel pooling is pure adds.
    w = (conv_w.reshape(Cout, Cin).T.astype(jnp.float32) * 0.25).astype(compute_dtype)

    itemsize = jnp.dtype(compute_dtype).itemsize
    NB, TH = _pick_blocks(N, H, W, Cin, itemsize, target_block_bytes)
    THo, Wo, Ho = TH // 2, W // 2, H // 2

    # Double-buffered VMEM footprint must fit the scoped limit (guards the
    # fall-back-to-full-image case for very large H*W*Cin).
    in_block = NB * TH * W * Cin * itemsize
    out_block = NB * THo * Wo * Cout * itemsize
    est = 2 * (in_block + out_block) + Cin * Cout * itemsize + 2 * Cin * 4
    assert est <= vmem_limit_bytes, (est, vmem_limit_bytes)

    out = pl.pallas_call(
        transition_kernel,
        out_shape=jax.ShapeDtypeStruct((N, Ho * Wo, Cout), compute_dtype),
        grid=(N // NB, H // TH),
        in_specs=[
            pl.BlockSpec((NB, TH, W, Cin), lambda n, i: (n, i, 0, 0)),
            pl.BlockSpec((1, Cin), lambda n, i: (0, 0)),
            pl.BlockSpec((1, Cin), lambda n, i: (0, 0)),
            pl.BlockSpec((Cin, Cout), lambda n, i: (0, 0)),
        ],
        out_specs=pl.BlockSpec((NB, THo * Wo, Cout), lambda n, i: (n, i, 0)),
        compiler_params=pltpu.CompilerParams(
            dimension_semantics=("parallel", "parallel"),
            vmem_limit_bytes=vmem_limit_bytes),
    )(x, scale.reshape(1, Cin), bias.reshape(1, Cin), w)

    out = out.reshape(N, Ho, Wo, Cout)              # free: splits the contiguous dim
    return jnp.transpose(out, (0, 3, 1, 2)).astype(jnp.float32)  # back to NCHW


def reference_forward(x_nchw, gamma, beta, conv_w, eps=EPS):
    """Plain-JAX reference mirroring the PyTorch module semantics."""
    N, Cin, H, W = x_nchw.shape
    Cout = conv_w.shape[0]
    mean = jnp.mean(x_nchw, axis=(0, 2, 3))
    var = jnp.var(x_nchw, axis=(0, 2, 3))
    xh = (x_nchw - mean[None, :, None, None]) / jnp.sqrt(var + eps)[None, :, None, None]
    xh = xh * gamma[None, :, None, None] + beta[None, :, None, None]
    xh = jnp.maximum(xh, 0.0)
    z = jnp.einsum('nchw,oc->nohw', xh, conv_w.reshape(Cout, Cin))
    z = z.reshape(N, Cout, H // 2, 2, W // 2, 2).mean(axis=(3, 5))
    return z


if __name__ == "__main__":
    num_input_features = 32
    num_output_features = 64
    N, H, W = 2, 16, 16

    key = jax.random.PRNGKey(0)
    kx, kw = jax.random.split(key)
    x = jax.random.normal(kx, (N, num_input_features, H, W), dtype=jnp.float32)
    gamma = jnp.ones((num_input_features,), jnp.float32)
    beta = jnp.zeros((num_input_features,), jnp.float32)
    conv_w = 0.05 * jax.random.normal(
        kw, (num_output_features, num_input_features, 1, 1), dtype=jnp.float32)

    ref = reference_forward(x, gamma, beta, conv_w)

    fwd = jax.jit(lambda xx, g, b, w: transition_forward(xx, g, b, w))
    out = jax.block_until_ready(fwd(x, gamma, beta, conv_w))
    assert out.shape == (N, num_output_features, H // 2, W // 2), out.shape
    err = float(jnp.max(jnp.abs(out - ref)))
    assert jnp.allclose(out, ref, rtol=1e-4, atol=1e-4), err

    print("KERNEL_OK")
</pallas_src>

<mosaic_0001>
module attributes {stable_mosaic.version = 11 : i64} {
  func.func @transition_kernel(%arg0: i32, %arg1: i32, %arg2: memref<1x16x16x32xf32, #tpu.memory_space<vmem>>, %arg3: memref<1x32xf32, #tpu.memory_space<vmem>>, %arg4: memref<1x32xf32, #tpu.memory_space<vmem>>, %arg5: memref<32x64xf32, #tpu.memory_space<vmem>>, %arg6: memref<1x64x64xf32, #tpu.memory_space<vmem>>) attributes {dimension_semantics = [#tpu.dimension_semantics<parallel>, #tpu.dimension_semantics<parallel>], iteration_bounds = array<i64: 2, 1>, scalar_prefetch = 0 : i64, scratch_operands = 0 : i64, tpu.core_type = #tpu.core_type<tc>, window_params = [{transform_indices = @transform_0, window_bounds = array<i64: 1, 16, 16, 32>}, {pipeline_mode = #tpu.pipeline_mode<synchronous>, transform_indices = @transform_1, window_bounds = array<i64: 1, 32>}, {pipeline_mode = #tpu.pipeline_mode<synchronous>, transform_indices = @transform_2, window_bounds = array<i64: 1, 32>}, {pipeline_mode = #tpu.pipeline_mode<synchronous>, transform_indices = @transform_3, window_bounds = array<i64: 32, 64>}, {transform_indices = @transform_4, window_bounds = array<i64: 1, 64, 64>}]} {
    %c0 = arith.constant 0 : index
    %c0_0 = arith.constant 0 : index
    %0 = vector.load %arg3[%c0, %c0_0] : memref<1x32xf32, #tpu.memory_space<vmem>>, vector<1x32xf32>
    %c0_1 = arith.constant 0 : index
    %c0_2 = arith.constant 0 : index
    %1 = vector.load %arg4[%c0_1, %c0_2] : memref<1x32xf32, #tpu.memory_space<vmem>>, vector<1x32xf32>
    %c0_3 = arith.constant 0 : index
    %c0_4 = arith.constant 0 : index
    %c0_5 = arith.constant 0 : index
    %c0_6 = arith.constant 0 : index
    %2 = tpu.strided_load %arg2[%c0_3, %c0_4, %c0_5, %c0_6] {strides = array<i32: 1, 1, 2, 1>} : memref<1x16x16x32xf32, #tpu.memory_space<vmem>>, vector<1x16x8x32xf32>
    %c0_7 = arith.constant 0 : index
    %c0_8 = arith.constant 0 : index
    %c1 = arith.constant 1 : index
    %c0_9 = arith.constant 0 : index
    %3 = tpu.strided_load %arg2[%c0_7, %c0_8, %c1, %c0_9] {strides = array<i32: 1, 1, 2, 1>} : memref<1x16x16x32xf32, #tpu.memory_space<vmem>>, vector<1x16x8x32xf32>
    %4 = vector.shape_cast %0 : vector<1x32xf32> to vector<1x1x1x32xf32>
    %5 = vector.broadcast %4 : vector<1x1x1x32xf32> to vector<1x16x8x32xf32>
    %6 = arith.mulf %2, %5 : vector<1x16x8x32xf32>
    %7 = vector.shape_cast %1 : vector<1x32xf32> to vector<1x1x1x32xf32>
    %8 = vector.broadcast %7 : vector<1x1x1x32xf32> to vector<1x16x8x32xf32>
    %9 = arith.addf %6, %8 : vector<1x16x8x32xf32>
    %cst = arith.constant 0.000000e+00 : f32
    %10 = vector.broadcast %cst : f32 to vector<1x16x8x32xf32>
    %11 = arith.maximumf %9, %10 : vector<1x16x8x32xf32>
    %12 = vector.shape_cast %0 : vector<1x32xf32> to vector<1x1x1x32xf32>
    %13 = vector.broadcast %12 : vector<1x1x1x32xf32> to vector<1x16x8x32xf32>
    %14 = arith.mulf %3, %13 : vector<1x16x8x32xf32>
    %15 = vector.shape_cast %1 : vector<1x32xf32> to vector<1x1x1x32xf32>
    %16 = vector.broadcast %15 : vector<1x1x1x32xf32> to vector<1x16x8x32xf32>
    %17 = arith.addf %14, %16 : vector<1x16x8x32xf32>
    %cst_10 = arith.constant 0.000000e+00 : f32
    %18 = vector.broadcast %cst_10 : f32 to vector<1x16x8x32xf32>
    %19 = arith.maximumf %17, %18 : vector<1x16x8x32xf32>
    %20 = arith.addf %11, %19 : vector<1x16x8x32xf32>
    %21 = vector.shape_cast %20 : vector<1x16x8x32xf32> to vector<1x8x2x8x32xf32>
    %22 = vector.extract_strided_slice %21 {offsets = [0, 0, 0, 0, 0], sizes = [1, 8, 1, 8, 32], strides = [1, 1, 1, 1, 1]} : vector<1x8x2x8x32xf32> to vector<1x8x1x8x32xf32>
    %23 = vector.shape_cast %22 : vector<1x8x1x8x32xf32> to vector<1x8x8x32xf32>
    %24 = vector.extract_strided_slice %21 {offsets = [0, 0, 1, 0, 0], sizes = [1, 8, 1, 8, 32], strides = [1, 1, 1, 1, 1]} : vector<1x8x2x8x32xf32> to vector<1x8x1x8x32xf32>
    %25 = vector.shape_cast %24 : vector<1x8x1x8x32xf32> to vector<1x8x8x32xf32>
    %26 = arith.addf %23, %25 : vector<1x8x8x32xf32>
    %27 = vector.shape_cast %26 : vector<1x8x8x32xf32> to vector<64x32xf32>
    %c0_11 = arith.constant 0 : index
    %c0_12 = arith.constant 0 : index
    %28 = vector.load %arg5[%c0_11, %c0_12] : memref<32x64xf32, #tpu.memory_space<vmem>>, vector<32x64xf32>
    %cst_13 = arith.constant dense<0.000000e+00> : vector<64x64xf32>
    %29 = tpu.matmul %27, %28, %cst_13 {dimension_numbers = #tpu.dot_dimension_numbers<[1], [0], [0], [1], [0, 0, 1, 1], [], []>} : vector<64x32xf32>, vector<32x64xf32>, vector<64x64xf32> -> vector<64x64xf32>
    %30 = vector.shape_cast %29 : vector<64x64xf32> to vector<1x64x64xf32>
    %c0_14 = arith.constant 0 : index
    %c0_15 = arith.constant 0 : index
    %c0_16 = arith.constant 0 : index
    %31 = vector.load %arg6[%c0_14, %c0_15, %c0_16] : memref<1x64x64xf32, #tpu.memory_space<vmem>>, vector<1x64x64xf32>
    tpu.vector_store %arg6[%c0_14, %c0_15, %c0_16], %30 {strides = array<i32>} : memref<1x64x64xf32, #tpu.memory_space<vmem>>, vector<1x64x64xf32>,
    return
  }
  func.func @transform_0(%arg0: i32, %arg1: i32) -> (i32, i32, i32, i32) {
    %c0_i32 = arith.constant 0 : i32
    %c0_i32_0 = arith.constant 0 : i32
    %c0_i32_1 = arith.constant 0 : i32
    return %arg0, %arg1, %c0_i32, %c0_i32_0 : i32, i32, i32, i32
  }
  func.func @transform_1(%arg0: i32, %arg1: i32) -> (i32, i32) {
    %c0_i32 = arith.constant 0 : i32
    %c0_i32_0 = arith.constant 0 : i32
    %c0_i32_1 = arith.constant 0 : i32
    return %c0_i32, %c0_i32_0 : i32, i32
  }
  func.func @transform_2(%arg0: i32, %arg1: i32) -> (i32, i32) {
    %c0_i32 = arith.constant 0 : i32
    %c0_i32_0 = arith.constant 0 : i32
    %c0_i32_1 = arith.constant 0 : i32
    return %c0_i32, %c0_i32_0 : i32, i32
  }
  func.func @transform_3(%arg0: i32, %arg1: i32) -> (i32, i32) {
    %c0_i32 = arith.constant 0 : i32
    %c0_i32_0 = arith.constant 0 : i32
    %c0_i32_1 = arith.constant 0 : i32
    return %c0_i32, %c0_i32_0 : i32, i32
  }
  func.func @transform_4(%arg0: i32, %arg1: i32) -> (i32, i32, i32) {
    %c0_i32 = arith.constant 0 : i32
    %c0_i32_0 = arith.constant 0 : i32
    return %arg0, %arg1, %c0_i32 : i32, i32, i32
  }
}

</mosaic_0001>

<bundles_post_ra>
// kernel: _lambda_.1
= control target key start
LH: loop header
LB: loop body
LE: loop exit
PB: predicated region body
PF: predicated region fallthrough
CT: control target
= control target key end

     0   :  { %9 = vsyncpa [#allocation3], 0  ;;  %s1184_s0 = inlined_call_operand.vmem [shape: f32[2,16,16,32], index: 0, kind: input, shape index: {}]   ;;  %s1185_s1 = inlined_call_operand.vmem [shape: f32[1,32], index: 1, kind: input, shape index: {}]   ;;  %s1186_s2 = inlined_call_operand.vmem [shape: f32[1,32], index: 2, kind: input, shape index: {}]   ;;  %s1187_s3 = inlined_call_operand.vmem [shape: f32[32,64], index: 3, kind: input, shape index: {}]   ;;  %s1188_s4 = inlined_call_operand.hbm [shape: f32[2,64,64], index: 4, kind: output, shape index: {}]  }
   0x1   :  { %11 = vsyncpa [#allocation3 + $0x1], 0  ;;  %s933_s15 = smov 0   ;;  %s935_s16 = smov 0  }
   0x2   :  { %s937_s17 = smov 0   ;;  %s939_s18 = smov 0  }
   0x3   :  { %s941_s19 = smov 0   ;;  %s943_s20 = smov 0  }
   0x4 LB: > { %s668_s21 = sadd.s32 4294967295, %s903_s20   ;;  %s669_s22 = sadd.s32 4294967294, %s903_s20   ;;  %s903_s20 = sphi %s943_s20, %s17_s20   ;;  %s899_s19 = sphi %s941_s19, %s1195_s19   ;;  %s895_s18 = sphi %s939_s18, %s1194_s18   ;;  %s891_s17 = sphi %s937_s17, %s1193_s17   ;;  %s887_s16 = sphi %s935_s16, %s1192_s16   ;;  %s883_s15 = sphi %s933_s15, %s1191_s15  }
   0x5   : > { %s29_s23 = sadd.s32 1, %s899_s19  ;;  %s129_s24 = sadd.s32 1, %s891_s17 }
   0x6   : > { %p31_p0 = scmp.ge.s32.totalorder %s29_s23, 2  ;;  %p139_p1 = scmp.ne.s32.totalorder %s891_s17, %s887_s16 }
   0x7   : > { %p140_p2 = scmp.eq.s32.totalorder %s668_s21, 1  ;;  %p145_p3 = scmp.ne.s32.totalorder %s887_s16, %s883_s15 }
   0x8   : > { %s1197_s23 = smov (%p31_p0, %s29_s23), 0  ;;  %p146_p5 = scmp.eq.s32.totalorder %s669_s22, 1 }
   0x9   : > { %p973_p4 = por %p140_p2, %p139_p1  ;;  %s124_s26 = ssub.s32 %s899_s19, %s1197_s23 }
   0xa   : > { %p672_p6 = scmp.ge.s32.totalorder %s903_s20, 1  ;;  %p127_p7 = scmp.eq.s32.totalorder %s124_s26, 0 }
   0xb   : > { %p980_p8 = por %p146_p5, %p145_p3  ;;  %p187_p9 = scmp.lt.s32.totalorder %s903_s20, 3 }
   0xc   : > { %s986_s28 = scalar_select %p127_p7, %s891_s17, %s129_s24  }
   0xd   : > { %p188_p10 = pnand %p672_p6, %p187_p9 }
   0xe   : > { %v427_v0 = vld [vmem:[%s1187_s3] sm:$0xff] (!%p188_p10)  ;;  %v428_v1 = vld [vmem:[%s1187_s3 + $0x8] sm:$0xff] (!%p188_p10)  ;;  %v429_v2 = vld [vmem:[%s1187_s3 + $0x10] sm:$0xff] (!%p188_p10)  ;;  %p219_p11 = scmp.lt.s32.totalorder (!%p188_p10), %s895_s18, 1  ;;  %vm431_vm0 = vcmask (!%p188_p10), 261120   ;;  %s215_s30 = sand.u32 (!%p188_p10), 1, %s887_s16  }
   0xf   : > { %191 = sbr.rel (%p188_p10) target bundleno = 291 (0x123), region = 36  ;;  %v756_v3 = vpack.c.bf16 (!%p188_p10), %v428_v1, %v427_v0  ;;  %v430_v4 = vld [vmem:[%s1187_s3 + $0x18] sm:$0xff] (!%p188_p10)  ;;  %v1005_v6 = vld [vmem:[%s1185_s1] ss:$0 sm:$0xff] (!%p188_p10)  ;;  %s673_s5 = sshll.u32 (!%p188_p10), %s215_s30, 6  ;;  %vm561_vm1 = vcmask (!%p188_p10), 523264  }
  0x10   : > { %v760_v5 = vpack.c.bf16 (!%p188_p10), %v430_v4, %v429_v2  ;;  %v1015_v7 = vld [vmem:[%s1186_s2] ss:$0 sm:$0xff] (!%p188_p10)  ;;  %s217_s6 = scalar_lea.vmem (!%p188_p10), [#allocation2], %s673_s5  ;;  %s723_s7 = sshll.u32 (!%p188_p10), %s895_s18, 10 }
  0x11   : > { %757 = vmatprep.subr.bf16.mxu0 (!%p188_p10), %v756_v3  ;;  %764 = vmatprep.subr.bf16.mxu1 (!%p188_p10), %v756_v3  ;;  %s586_s8 = sshll.u32 (!%p188_p10), %s217_s6, 4  ;;  %s905_s13 = smov (!%p188_p10), [#allocation2]   ;;  %s1134_s8 = int_to_ptr.vmem [resolvable:$true] %s586_s8 }
  0x12   : > { %759 = vmatpush3.bf16.msra.mxu0 (!%p188_p10), %v756_v3  ;;  %766 = vmatpush3.bf16.msra.mxu1 (!%p188_p10), %v756_v3  ;;  %s829_s14 = sshll.u32 (!%p188_p10), %s905_s13, 4  ;;  %s830_s14 = int_to_ptr.vmem [resolvable:$false] %s829_s14 }
  0x13   : > { %761 = vmatprep.subr.bf16.mxu0 (!%p188_p10), %v760_v5  ;;  %765 = vmatprep.subr.bf16.mxu1 (!%p188_p10), %v760_v5  ;;  %s831_s21 = scalar_lea.vmem (!%p188_p10), %s830_s14, 2048  ;;  %p832_p1 = scmp.lt.s32.totalorder (!%p188_p10), %s1134_s8, %s830_s14 }
  0x16   : > { %s220_s11 = scalar_select %p219_p11, %s895_s18, 1  ;;  %763 = vmatpush3.bf16.msra.mxu0 %v760_v5  ;;  %767 = vmatpush3.bf16.msra.mxu1 %v760_v5 }
  0x17   : > { %s1138_s18 = scalar_lea.sflag [#allocation3], %s215_s30 }
  0x18   : > { %s722_s12 = sshll.u32 %s220_s11, 8  ;;  %s1132_s11 = scalar_lea.hbm %s1188_s4, %s723_s7 }
  0x19   : > { %s1010_s24 = scalar_lea.vmem %s1184_s0, %s722_s12  ;;  %s825_s12 = scalar_lea.vmem %s1134_s8, 1024 }
  0x1a   : > { %v232_v8 = vld [vmem:[%s1010_s24] ss:$2 sm:$0xff]  ;;  %v676_v9 = vld [vmem:[%s1010_s24 + $0x10] ss:$2 sm:$0xff]  ;;  %v691_v10 = vld [vmem:[%s1010_s24 + $0x1] ss:$2 sm:$0xff]  ;;  %p826_p12 = scmp.ne.s32.totalorder %s1134_s8, %s825_s12  ;;  %p833_p2 = scmp.lt.s32.totalorder %s831_s21, %s825_s12 }
  0x1b   : > { %v692_v11 = vld [vmem:[%s1010_s24 + $0x11] ss:$2 sm:$0xff]  ;;  %v301_v12 = vmul.f32 %v1005_v6, %v232_v8  ;;  %v302_v13 = vmul.f32 %v1005_v6, %v676_v9  ;;  %v355_v14 = vmul.f32 %v1005_v6, %v691_v10  ;;  %v683_v15 = vld [vmem:[%s1010_s24 + $0x80] ss:$2 sm:$0xff]  ;;  %v684_v16 = vld [vmem:[%s1010_s24 + $0x90] ss:$2 sm:$0xff] }
  0x1c   : > { %v356_v17 = vmul.f32 %v1005_v6, %v692_v11  ;;  %v699_v18 = vld [vmem:[%s1010_s24 + $0x81] ss:$2 sm:$0xff]  ;;  %v700_v19 = vld [vmem:[%s1010_s24 + $0x91] ss:$2 sm:$0xff]  ;;  %v309_v20 = vmul.f32 %v1005_v6, %v683_v15  ;;  %v310_v21 = vmul.f32 %v1005_v6, %v684_v16  ;;  %v677_v30 = vld [vmem:[%s1010_s24 + $0x20] ss:$2 sm:$0xff]  ;;  %p827_p13 = pnand %p826_p12, %p973_p4  ;;  %p834_p3 = por %p833_p2, %p832_p1 }
  0x1d   : > { %v323_v22 = vadd.f32 %v1015_v7, %v301_v12  ;;  %v324_v23 = vadd.f32 %v1015_v7, %v302_v13  ;;  %v371_v24 = vadd.f32 %v1015_v7, %v355_v14  ;;  %v363_v25 = vmul.f32 %v1005_v6, %v699_v18  ;;  %v678_v31 = vld [vmem:[%s1010_s24 + $0x30] ss:$2 sm:$0xff]  ;;  %v693_v32 = vld [vmem:[%s1010_s24 + $0x21] ss:$2 sm:$0xff]  ;;  %v694_v37 = vld [vmem:[%s1010_s24 + $0x31] ss:$2 sm:$0xff] }
  0x1e   : > { %v372_v26 = vadd.f32 %v1015_v7, %v356_v17  ;;  %v331_v27 = vadd.f32 %v1015_v7, %v309_v20  ;;  %v332_v28 = vadd.f32 %v1015_v7, %v310_v21  ;;  %v364_v29 = vmul.f32 %v1005_v6, %v700_v19  ;;  %v685_v42 = vld [vmem:[%s1010_s24 + $0xa0] ss:$2 sm:$0xff]  ;;  %v686_v51 = vld [vmem:[%s1010_s24 + $0xb0] ss:$2 sm:$0xff]  ;;  %v701_v55 = vld [vmem:[%s1010_s24 + $0xa1] ss:$2 sm:$0xff]  ;;  %p828_p0 = pneg %p827_p13 }
  0x1f   : > { %v339_v33 = vmax.f32 %v323_v22, 0.0  ;;  %v340_v34 = vmax.f32 %v324_v23, 0.0  ;;  %v387_v35 = vmax.f32 %v371_v24, 0.0  ;;  %v379_v36 = vadd.f32 %v1015_v7, %v363_v25  ;;  %v702_v61 = vld [vmem:[%s1010_s24 + $0xb1] ss:$2 sm:$0xff] }
  0x20   : > { %v388_v38 = vmax.f32 %v372_v26, 0.0  ;;  %v347_v39 = vmax.f32 %v331_v27, 0.0  ;;  %v348_v40 = vmax.f32 %v332_v28, 0.0  ;;  %v380_v41 = vadd.f32 %v1015_v7, %v364_v29  ;;  %v679_v62 = vld [vmem:[%s1010_s24 + $0x40] ss:$2 sm:$0xff]  ;;  %p835_p5 = pnand %p834_p3, %p828_p0 }
  0x21   : > { %v403_v43 = vadd.f32 %v387_v35, %v339_v33  ;;  %v395_v44 = vmax.f32 %v379_v36, 0.0  ;;  %v303_v45 = vmul.f32 %v1005_v6, %v677_v30  ;;  %v304_v46 = vmul.f32 %v1005_v6, %v678_v31  ;;  %v680_v3 = vld [vmem:[%s1010_s24 + $0x50] ss:$2 sm:$0xff]  ;;  %v695_v10 = vld [vmem:[%s1010_s24 + $0x41] ss:$2 sm:$0xff] }
  0x22   : > { %v404_v47 = vadd.f32 %v388_v38, %v340_v34  ;;  %v396_v48 = vmax.f32 %v380_v41, 0.0  ;;  %v357_v49 = vmul.f32 %v1005_v6, %v693_v32  ;;  %v358_v50 = vmul.f32 %v1005_v6, %v694_v37  ;;  %v696_v14 = vld [vmem:[%s1010_s24 + $0x51] ss:$2 sm:$0xff]  ;;  %v687_v20 = vld [vmem:[%s1010_s24 + $0xc0] ss:$2 sm:$0xff] }
  0x23   : > { %v411_v52 = vadd.f32 %v395_v44, %v347_v39  ;;  %v325_v53 = vadd.f32 %v1015_v7, %v303_v45  ;;  %v326_v54 = vadd.f32 %v1015_v7, %v304_v46  ;;  %v311_v56 = vmul.f32 %v1005_v6, %v685_v42  ;;  %v688_v25 = vld [vmem:[%s1010_s24 + $0xd0] ss:$2 sm:$0xff]  ;;  %v703_v30 = vld [vmem:[%s1010_s24 + $0xc1] ss:$2 sm:$0xff]  ;;  %v704_v34 = vld [vmem:[%s1010_s24 + $0xd1] ss:$2 sm:$0xff] }
  0x24   : > { %v419_v57 = vadd.f32 %v404_v47, %v403_v43  ;;  %v412_v58 = vadd.f32 %v396_v48, %v348_v40  ;;  %v373_v59 = vadd.f32 %v1015_v7, %v357_v49  ;;  %v374_v60 = vadd.f32 %v1015_v7, %v358_v50  ;;  %v681_v36 = vld [vmem:[%s1010_s24 + $0x60] ss:$2 sm:$0xff]  ;;  %v682_v45 = vld [vmem:[%s1010_s24 + $0x70] ss:$2 sm:$0xff]  ;;  %v697_v49 = vld [vmem:[%s1010_s24 + $0x61] ss:$2 sm:$0xff] }
  0x25   : > { %v341_v63 = vmax.f32 %v325_v53, 0.0  ;;  %v342_v0 = vmax.f32 %v326_v54, 0.0  ;;  %v312_v1 = vmul.f32 %v1005_v6, %v686_v51  ;;  %v333_v2 = vadd.f32 %v1015_v7, %v311_v56  ;;  %v698_v50 = vld [vmem:[%s1010_s24 + $0x71] ss:$2 sm:$0xff]  ;;  %v689_v56 = vld [vmem:[%s1010_s24 + $0xe0] ss:$2 sm:$0xff] }
  0x26   : > { %744 = vmatprep.mubr.msk.f32.mxu0 %vm431_vm0, %v419_v57  ;;  %v423_v4 = vadd.f32 %v412_v58, %v411_v52  ;;  %v389_v5 = vmax.f32 %v373_v59, 0.0  ;;  %v390_v8 = vmax.f32 %v374_v60, 0.0  ;;  %v365_v9 = vmul.f32 %v1005_v6, %v701_v55 }
  0x27   : > { %v334_v11 = vadd.f32 %v1015_v7, %v312_v1  ;;  %v349_v12 = vmax.f32 %v333_v2, 0.0  ;;  %v366_v13 = vmul.f32 %v1005_v6, %v702_v61  ;;  %v305_v15 = vmul.f32 %v1005_v6, %v679_v62  ;;  %v690_v1 = vld [vmem:[%s1010_s24 + $0xf0] ss:$2 sm:$0xff] }
  0x28   : > { %750 = vmatprep.mubr.msk.f32.mxu1 %vm431_vm0, %v423_v4  ;;  %v405_v16 = vadd.f32 %v389_v5, %v341_v63  ;;  %v406_v17 = vadd.f32 %v390_v8, %v342_v0  ;;  %v381_v18 = vadd.f32 %v1015_v7, %v365_v9  ;;  %v306_v19 = vmul.f32 %v1005_v6, %v680_v3  ;;  %v705_v5 = vld [vmem:[%s1010_s24 + $0xe1] ss:$2 sm:$0xff]  ;;  %v706_v8 = vld [vmem:[%s1010_s24 + $0xf1] ss:$2 sm:$0xff] }
  0x29   : > { %v350_v21 = vmax.f32 %v334_v11, 0.0  ;;  %v382_v22 = vadd.f32 %v1015_v7, %v366_v13  ;;  %v327_v23 = vadd.f32 %v1015_v7, %v305_v15  ;;  %v359_v24 = vmul.f32 %v1005_v6, %v695_v10 }
  0x2a   : > { %v420_v26 = vadd.f32 %v406_v17, %v405_v16  ;;  %v397_v27 = vmax.f32 %v381_v18, 0.0  ;;  %v328_v28 = vadd.f32 %v1015_v7, %v306_v19  ;;  %v360_v29 = vmul.f32 %v1005_v6, %v696_v14 }
  0x2b   : > { %v398_v31 = vmax.f32 %v382_v22, 0.0  ;;  %v343_v32 = vmax.f32 %v327_v23, 0.0  ;;  %v375_v33 = vadd.f32 %v1015_v7, %v359_v24  ;;  %v313_v35 = vmul.f32 %v1005_v6, %v687_v20 }
  0x2c   : > { %745 = vmatmul.mubr.msk.f32.vlgmr.msra.gmra.mrb[0].mxu0 %vm431_vm0, %v420_v26  ;;  %v413_v37 = vadd.f32 %v397_v27, %v349_v12  ;;  %v344_v38 = vmax.f32 %v328_v28, 0.0  ;;  %v376_v39 = vadd.f32 %v1015_v7, %v360_v29  ;;  %v314_v40 = vmul.f32 %v1005_v6, %v688_v25 }
  0x2d   : > { %v414_v41 = vadd.f32 %v398_v31, %v350_v21  ;;  %v391_v42 = vmax.f32 %v375_v33, 0.0  ;;  %v335_v43 = vadd.f32 %v1015_v7, %v313_v35  ;;  %v367_v44 = vmul.f32 %v1005_v6, %v703_v30 }
  0x2e   : > { %v392_v46 = vmax.f32 %v376_v39, 0.0  ;;  %v336_v47 = vadd.f32 %v1015_v7, %v314_v40  ;;  %v368_v48 = vmul.f32 %v1005_v6, %v704_v34  ;;  %v307_v51 = vmul.f32 %v1005_v6, %v681_v36 }
  0x2f   : > { %v424_v52 = vadd.f32 %v414_v41, %v413_v37  ;;  %v407_v53 = vadd.f32 %v391_v42, %v343_v32  ;;  %v351_v54 = vmax.f32 %v335_v43, 0.0  ;;  %v383_v55 = vadd.f32 %v1015_v7, %v367_v44 }
  0x30   : > { %v408_v57 = vadd.f32 %v392_v46, %v344_v38  ;;  %v352_v58 = vmax.f32 %v336_v47, 0.0  ;;  %v384_v59 = vadd.f32 %v1015_v7, %v368_v48  ;;  %v308_v60 = vmul.f32 %v1005_v6, %v682_v45 }
  0x31   : > { %751 = vmatmul.mubr.msk.f32.vlgmr.msra.gmra.mrb[0].mxu1 %vm431_vm0, %v424_v52  ;;  %v399_v61 = vmax.f32 %v383_v55, 0.0  ;;  %v329_v62 = vadd.f32 %v1015_v7, %v307_v51  ;;  %v361_v63 = vmul.f32 %v1005_v6, %v697_v49  ;;  %v362_v0 = vmul.f32 %v1005_v6, %v698_v50 }
  0x32   : > { %v421_v2 = vadd.f32 %v408_v57, %v407_v53  ;;  %v400_v3 = vmax.f32 %v384_v59, 0.0  ;;  %v330_v4 = vadd.f32 %v1015_v7, %v308_v60  ;;  %v315_v9 = vmul.f32 %v1005_v6, %v689_v56 }
  0x33   : > { %v415_v10 = vadd.f32 %v399_v61, %v351_v54  ;;  %v345_v11 = vmax.f32 %v329_v62, 0.0  ;;  %v377_v12 = vadd.f32 %v1015_v7, %v361_v63  ;;  %v378_v13 = vadd.f32 %v1015_v7, %v362_v0 }
  0x34   : > { %747 = vmatprep.mubr.msk.f32.mxu0 %vm431_vm0, %v421_v2  ;;  %v416_v14 = vadd.f32 %v400_v3, %v352_v58  ;;  %v346_v15 = vmax.f32 %v330_v4, 0.0  ;;  %v316_v16 = vmul.f32 %v1005_v6, %v690_v1  ;;  %v337_v17 = vadd.f32 %v1015_v7, %v315_v9 }
  0x35   : > { %v393_v18 = vmax.f32 %v377_v12, 0.0  ;;  %v394_v19 = vmax.f32 %v378_v13, 0.0  ;;  %v369_v20 = vmul.f32 %v1005_v6, %v705_v5  ;;  %v370_v21 = vmul.f32 %v1005_v6, %v706_v8 }
  0x36   : > { %v425_v22 = vadd.f32 %v416_v14, %v415_v10  ;;  %v338_v23 = vadd.f32 %v1015_v7, %v316_v16  ;;  %v353_v24 = vmax.f32 %v337_v17, 0.0 }
  0x37   : > { %v409_v25 = vadd.f32 %v393_v18, %v345_v11  ;;  %v410_v26 = vadd.f32 %v394_v19, %v346_v15  ;;  %v385_v27 = vadd.f32 %v1015_v7, %v369_v20  ;;  %v386_v28 = vadd.f32 %v1015_v7, %v370_v21 }
  0x38   : > { %753 = vmatprep.mubr.msk.f32.mxu1 %vm431_vm0, %v425_v22  ;;  %v354_v29 = vmax.f32 %v338_v23, 0.0 }
  0x39   : > { %v422_v30 = vadd.f32 %v410_v26, %v409_v25  ;;  %v401_v31 = vmax.f32 %v385_v27, 0.0  ;;  %v402_v32 = vmax.f32 %v386_v28, 0.0 }
  0x3b   : > { %748 = vmatmul.mubr.msk.f32.gmra.mrb[2].mxu0 %vm431_vm0, %v422_v30  ;;  %v417_v6 = vadd.f32 %v401_v31, %v353_v24  ;;  %v418_v33 = vadd.f32 %v402_v32, %v354_v29 }
  0x3d   : > { %v426_v34 = vadd.f32 %v418_v33, %v417_v6 }
  0x3f   : > { %754 = vmatmul.mubr.msk.f32.gmra.mrb[2].mxu1 %vm431_vm0, %v426_v34 }
  0xff   : > { %v746_v35 = vpop.f32.mrb[0].mxu0 }
 0x100   : > { %563 = vst.msk [vmem:[%s217_s6 + $0x8] sm:$0xff] %vm561_vm1, %v746_v35  ;;  %v522_v7 = vpop.f32.mrb[1].mxu0 }
 0x101   : > { %562 = vst.msk [vmem:[%s217_s6] sm:$0xff] %vm561_vm1, %v522_v7 }
 0x104   : > { %v752_v36 = vpop.f32.mrb[0].mxu1 }
 0x105   : > { %567 = vst.msk [vmem:[%s217_s6 + $0x28] sm:$0xff] %vm561_vm1, %v752_v36  ;;  %v542_v37 = vpop.f32.mrb[1].mxu1 }
 0x106   : > { %566 = vst.msk [vmem:[%s217_s6 + $0x20] sm:$0xff] %vm561_vm1, %v542_v37 }
 0x10e   : > { %v749_v38 = vpop.f32.mrb[2].mxu0 }
 0x10f   : > { %565 = vst.msk [vmem:[%s217_s6 + $0x18] sm:$0xff] %vm561_vm1, %v749_v38  ;;  %v532_v39 = vpop.f32.mrb[3].mxu0 }
 0x110   : > { %564 = vst.msk [vmem:[%s217_s6 + $0x10] sm:$0xff] %vm561_vm1, %v532_v39 }
 0x112   : > { %v755_v40 = vpop.f32.mrb[2].mxu1 }
 0x113   : > { %569 = vst.msk [vmem:[%s217_s6 + $0x38] sm:$0xff] %vm561_vm1, %v755_v40  ;;  %v552_v41 = vpop.f32.mrb[3].mxu1 }
 0x114   : > { %568 = vst.msk [vmem:[%s217_s6 + $0x30] sm:$0xff] %vm561_vm1, %v552_v41 }
 0x115   : > { %838 = shalt.err (!%p835_p5)
}
 0x116   : > { %s839_s22 = scalar_lea.hbm %s1132_s11, 1024  ;;  %s843_s29 = scalar_lea.hbm %s1188_s4, 2048 }
 0x117   : > { %p840_p6 = scmp.ne.s32.totalorder %s1132_s11, %s839_s22  ;;  %p844_p10 = scmp.lt.u32.totalorder %s1132_s11, %s1188_s4 }
 0x118   : > { %p845_p11 = scmp.lt.u32.totalorder %s843_s29, %s839_s22  ;;  %p847_p13 = scmp.lt.u32.totalorder %s839_s22, %s1132_s11 }
 0x119   : > { %p841_p7 = pnand %p840_p6, %p973_p4 }
 0x11a   : > { %p846_p12 = por %p845_p11, %p844_p10 }
 0x11b   : > { %p842_p9 = pneg %p841_p7 }
 0x11c   : > { %p848_p0 = por %p847_p13, %p846_p12 }
 0x11e   : > { %p849_p1 = pnand %p848_p0, %p842_p9 }
 0x120   : > { %852 = shalt.err (!%p849_p1)
}
 0x121   : > { %s906_s6 = smov 128   ;;  %s907_s7 = smov 8  }
 0x122   : > { %768 = dma.vmem_to_hbm [thread:$0]  (%p973_p4), %s1134_s8, 1024, %s1132_s11, %s1138_s18, %s906_s6, %s906_s6, %s907_s7  }
 0x123 PF: > { %p774_p2 = scmp.ge.s32.totalorder %s903_s20, 2  ;;  %s601_s9 = sand.u32 1, %s883_s15  }
 0x124   : > { %s602_s10 = scalar_lea.sflag [#allocation3], %s601_s9 }
 0x125   : > { %p771_p3 = pnand %p774_p2, %p980_p8 }
 0x127   : > { %878 = dma.done.wait (!%p771_p3), %s602_s10, 1024  }
 0x128   : > { %880 = vsyncadd (!%p771_p3), %s602_s10, 4294966272  ;;  %s17_s20 = sadd.s32 1, %s903_s20   ;;  %s1191_s15 = smov %s887_s16 }
 0x129   : > { %p14_p5 = scmp.ge.s32.totalorder %s17_s20, 4   ;;  %s1192_s16 = smov %s891_s17 }
 0x12a   : > { %s1193_s17 = smov %s986_s28  ;;  %s1194_s18 = smov %s899_s19 }
 0x12b   : > { %s1195_s19 = smov %s1197_s23  ;;  %16 = sbr.rel (!%p14_p5) target bundleno = 4 (0x4), region = 102 }
 0x132   :  { %607 = vsyncpa [#allocation3], 1 }
 0x133   :  { %609 = vsyncpa [#allocation3 + $0x1], 1 }

</bundles_post_ra>
